<compile_context>
chip_gen: v7x
topology: tpu7x:2x2x1
jax: 0.10.0
libtpu: 0.0.40
codegen_flags: <defaults>
</compile_context>

<pallas_src>
import functools

import jax
import jax.numpy as jnp
from jax.experimental import pallas as pl
from jax.experimental.pallas import tpu as pltpu


def _mlp_kernel(x_ref, w1_ref, b1_ref, w2_ref, b2_ref, o_ref):
    """One batch tile of  out = sigmoid(x @ W1^T + b1) @ w2^T + b2.

    Shapes (pack = feature lane-packing factor, bt = batch tile):
      x_ref : (bt/pack, pack*F)  f32   streamed; cast to bf16 in-kernel
      w1_ref: (pack*F, pack*H)   bf16  block-diagonal W1^T (resident)
      b1_ref: (1, pack*H)        f32   bias, tiled `pack` times
      w2_ref: (pack, pack*H)     f32   block-diagonal layer_out weight
      b2_ref: (1,)               f32   SMEM scalar
      o_ref : (pack, bt/pack)    f32   lane-dense output slab
    """
    # Layer 1 on the MXU.  The f32->bf16 cast happens here (free under the HBM
    # roofline) rather than in the wrapper, which would cost an extra HBM pass.
    # TODO(synk): if the upstream producer can emit bf16 x, drop the cast.
    x = x_ref[...].astype(jnp.bfloat16)
    h = jnp.dot(x, w1_ref[...], preferred_element_type=jnp.float32)   # (bt/pack, pack*H)
    h = jax.nn.sigmoid(h + b1_ref[...])          # f32 VPU + EUP (v5e-safe)

    # Layer 2: contract the block-diagonal w2 with h on the last axis
    # (q @ k^T pattern) -> lane-dense (pack, bt/pack) result, unmasked stores.
    prod = jax.lax.dot_general(
        w2_ref[...], h,
        dimension_numbers=(((1,), (1,)), ((), ())),
        preferred_element_type=jnp.float32)
    o_ref[...] = (prod + b2_ref[0]).astype(o_ref.dtype)


def _round_up(x, m):
    return ((x + m - 1) // m) * m


def _pack_factor(num_features):
    # Fold `pack` batch rows into one VMEM row so the x tile does not lane-pad
    # F -> 128 (F=32 would waste 4x VMEM and fill only K=32 of the MXU).
    # Capped at 16 so batch sub-tiles stay sublane-aligned for small tiles.
    if num_features < 128 and 128 % num_features == 0:
        return min(128 // num_features, 16)
    return 1


def _pick_batch_tile(batch, pack):
    # Big tiles amortize the ~0.35us fixed per-step cost; prefer >=4 grid steps
    # (2 per TensorCore on v7x); cap at 8192 rows so the working set stays far
    # below v7x's 64 MiB VMEM and v5e's 16 MiB scoped default.  Tiles are
    # 128*pack-aligned to keep the (pack, bt/pack) output block lane-aligned.
    align = 128 * pack
    candidates = [c for c in (8192, 4096, 2048, 1024, 512, 256, 128) if c % align == 0]
    for want_steps in (4, 2):
        for bt in candidates:                      # largest first
            if pl.cdiv(batch, bt) >= want_steps:
                return bt
    # Tiny batch: one (padded) tile; only needs sublane alignment.
    return _round_up(batch, 8 * pack)


@functools.partial(jax.jit, static_argnames=("batch_tile",))
def linear_net_1(x, w1, b1, w2, b2, *, batch_tile=None):
    """Forward pass of LinearNet_1.

    x : [B, F] float32
    w1: [H, F]  (PyTorch layer_1.weight layout),   b1: [H]
    w2: [1, H]  (PyTorch layer_out.weight layout), b2: [1]
    returns [B, 1] float32
    """
    B, F = x.shape
    H = w1.shape[0]

    pack = _pack_factor(F)
    if batch_tile is None:
        batch_tile = _pick_batch_tile(B, pack)
    bt = batch_tile
    num_tiles = pl.cdiv(B, bt)
    assert bt % (8 * pack) == 0, "batch_tile must be a multiple of 8*pack"
    if num_tiles > 1:
        assert bt % (128 * pack) == 0, \
            "multi-tile batch_tile must be a multiple of 128*pack"
    b_pad = num_tiles * bt

    # Pad ragged batches (instead of one monolithic tile) so DMA/compute still
    # pipeline and the 'parallel' batch axis can shard across v7x TensorCores.
    if b_pad != B:
        x = jnp.pad(x, ((0, b_pad - B), (0, 0)))

    # Lane packing: rows are contiguous, so this reshape is free.
    x_packed = x.reshape(b_pad // pack, pack * F)                      # f32, no cast

    eye = jnp.eye(pack, dtype=jnp.float32)
    w1_bd = jnp.kron(eye, jnp.transpose(w1)).astype(jnp.bfloat16)      # (pack*F, pack*H)
    w2_bd = jnp.kron(eye, w2.reshape(1, H)).astype(jnp.float32)        # (pack,   pack*H)
    b1_p = jnp.tile(b1.astype(jnp.float32), pack).reshape(1, pack * H)
    b2_1d = b2.reshape(1).astype(jnp.float32)

    cost = pl.CostEstimate(
        flops=2 * b_pad * F * H + 2 * b_pad * H,
        transcendentals=b_pad * H,                                     # sigmoid
        bytes_accessed=(x_packed.size * 4 + b_pad * 4
                        + w1_bd.size * 2 + (b1_p.size + w2_bd.size + 1) * 4),
    )

    out_packed = pl.pallas_call(
        _mlp_kernel,
        out_shape=jax.ShapeDtypeStruct((pack, b_pad // pack), jnp.float32),
        grid_spec=pltpu.PrefetchScalarGridSpec(
            num_scalar_prefetch=0,
            grid=(num_tiles,),
            in_specs=[
                pl.BlockSpec((bt // pack, pack * F), lambda i: (i, 0)),   # x (streamed)
                pl.BlockSpec((pack * F, pack * H), lambda i: (0, 0)),     # W1^T bd (resident)
                pl.BlockSpec((1, pack * H), lambda i: (0, 0)),            # b1
                pl.BlockSpec((pack, pack * H), lambda i: (0, 0)),         # w2 bd
                pl.BlockSpec(memory_space=pltpu.MemorySpace.SMEM),        # b2 scalar
            ],
            out_specs=pl.BlockSpec((pack, bt // pack), lambda i: (0, i)),
        ),
        compiler_params=pltpu.CompilerParams(
            dimension_semantics=("parallel",),
            vmem_limit_bytes=32 * 1024 * 1024,
        ),
        cost_estimate=cost,
    )(x_packed, w1_bd, b1_p, w2_bd, b2_1d)

    # Un-pack the lane-dense slab: row pack*i + j lives at out_packed[j, i].
    out = jnp.transpose(out_packed).reshape(b_pad)[:B]
    return out.reshape(B, 1)


def _reference_bf16(x, w1, b1, w2, b2):
    # Mirrors the kernel's bf16 layer-1 matmul inputs (f32 accumulation).
    xb = x.astype(jnp.bfloat16).astype(jnp.float32)
    w1b = w1.astype(jnp.bfloat16).astype(jnp.float32)
    h = jax.nn.sigmoid(xb @ w1b.T + b1)
    return (h * w2).sum(axis=-1, keepdims=True) + b2


if __name__ == "__main__":
    # (batch, num_features, num_hidden) — small shapes:
    #  * (256, 32, 64):  lane-packed path (pack=4), single tile
    #  * (1111, 32, 64): ragged batch -> padded multi-tile grid
    #  * (384, 48, 40):  feature dim that can't lane-pack (pack=1), padded grid
    configs = [(256, 32, 64), (1111, 32, 64), (384, 48, 40)]

    key = jax.random.PRNGKey(0)
    for batch, F, H in configs:
        key, kx, kw1, kb1, kw2, kb2 = jax.random.split(key, 6)
        x = jax.random.normal(kx, (batch, F), dtype=jnp.float32)

        # PyTorch-style uniform(-1/sqrt(fan_in), 1/sqrt(fan_in)) init, torch layouts.
        bound1 = 1.0 / float(F) ** 0.5
        w1 = jax.random.uniform(kw1, (H, F), minval=-bound1, maxval=bound1,
                                dtype=jnp.float32)
        b1 = jax.random.uniform(kb1, (H,), minval=-bound1, maxval=bound1,
                                dtype=jnp.float32)
        bound2 = 1.0 / float(H) ** 0.5
        w2 = jax.random.uniform(kw2, (1, H), minval=-bound2, maxval=bound2,
                                dtype=jnp.float32)
        b2 = jax.random.uniform(kb2, (1,), minval=-bound2, maxval=bound2,
                                dtype=jnp.float32)

        out = jax.block_until_ready(linear_net_1(x, w1, b1, w2, b2))
        assert out.shape == (batch, 1)

        ref = _reference_bf16(x, w1, b1, w2, b2)
        err = float(jnp.max(jnp.abs(out - ref)))
        assert jnp.allclose(out, ref, atol=5e-4, rtol=5e-4), (batch, F, H, err)

        # Loose sanity check against the full-f32 PyTorch-equivalent forward.
        h_f32 = jax.nn.sigmoid(x @ w1.T + b1)
        ref_f32 = (h_f32 * w2).sum(axis=-1, keepdims=True) + b2
        assert jnp.allclose(out, ref_f32, atol=5e-2, rtol=5e-2), (batch, F, H)

    print("KERNEL_OK")
</pallas_src>

<mosaic_0001>
module attributes {stable_mosaic.version = 11 : i64} {
  func.func @_mlp_kernel(%arg0: i32, %arg1: memref<64x128xf32, #tpu.memory_space<vmem>>, %arg2: memref<128x256xbf16, #tpu.memory_space<vmem>>, %arg3: memref<1x256xf32, #tpu.memory_space<vmem>>, %arg4: memref<4x256xf32, #tpu.memory_space<vmem>>, %arg5: memref<1xf32, #tpu.memory_space<smem>>, %arg6: memref<4x64xf32, #tpu.memory_space<vmem>>) attributes {dimension_semantics = [#tpu.dimension_semantics<parallel>], iteration_bounds = array<i64: 1>, scalar_prefetch = 0 : i64, scratch_operands = 0 : i64, tpu.core_type = #tpu.core_type<tc>, window_params = [{transform_indices = @transform_0, window_bounds = array<i64: 64, 128>}, {pipeline_mode = #tpu.pipeline_mode<synchronous>, transform_indices = @transform_1, window_bounds = array<i64: 128, 256>}, {pipeline_mode = #tpu.pipeline_mode<synchronous>, transform_indices = @transform_2, window_bounds = array<i64: 1, 256>}, {pipeline_mode = #tpu.pipeline_mode<synchronous>, transform_indices = @transform_3, window_bounds = array<i64: 4, 256>}, {transform_indices = @transform_4, window_bounds = array<i64: 1>}, {transform_indices = @transform_5, window_bounds = array<i64: 4, 64>}]} {
    %c0 = arith.constant 0 : index
    %c0_0 = arith.constant 0 : index
    %0 = vector.load %arg1[%c0, %c0_0] : memref<64x128xf32, #tpu.memory_space<vmem>>, vector<64x128xf32>
    %1 = arith.truncf %0 : vector<64x128xf32> to vector<64x128xbf16>
    %c0_1 = arith.constant 0 : index
    %c0_2 = arith.constant 0 : index
    %2 = vector.load %arg2[%c0_1, %c0_2] : memref<128x256xbf16, #tpu.memory_space<vmem>>, vector<128x256xbf16>
    %cst = arith.constant dense<0.000000e+00> : vector<64x256xf32>
    %3 = tpu.matmul %1, %2, %cst {dimension_numbers = #tpu.dot_dimension_numbers<[1], [0], [0], [1], [0, 0, 1, 1], [], []>} : vector<64x128xbf16>, vector<128x256xbf16>, vector<64x256xf32> -> vector<64x256xf32>
    %c0_3 = arith.constant 0 : index
    %c0_4 = arith.constant 0 : index
    %4 = vector.load %arg3[%c0_3, %c0_4] : memref<1x256xf32, #tpu.memory_space<vmem>>, vector<1x256xf32>
    %5 = vector.broadcast %4 : vector<1x256xf32> to vector<64x256xf32>
    %6 = arith.addf %3, %5 : vector<64x256xf32>
    %7 = arith.negf %6 : vector<64x256xf32>
    %8 = math.exp %7 : vector<64x256xf32>
    %cst_5 = arith.constant 1.000000e+00 : f32
    %9 = vector.broadcast %cst_5 : f32 to vector<64x256xf32>
    %10 = arith.addf %9, %8 : vector<64x256xf32>
    %11 = arith.divf %9, %10 : vector<64x256xf32>
    %c0_6 = arith.constant 0 : index
    %c0_7 = arith.constant 0 : index
    %12 = vector.load %arg4[%c0_6, %c0_7] : memref<4x256xf32, #tpu.memory_space<vmem>>, vector<4x256xf32>
    %cst_8 = arith.constant dense<0.000000e+00> : vector<4x64xf32>
    %13 = tpu.matmul %12, %11, %cst_8 {dimension_numbers = #tpu.dot_dimension_numbers<[1], [1], [0], [0], [0, 0, 1, 0], [], []>} : vector<4x256xf32>, vector<64x256xf32>, vector<4x64xf32> -> vector<4x64xf32>
    %c0_9 = arith.constant 0 : index
    %14 = memref.load %arg5[%c0_9] : memref<1xf32, #tpu.memory_space<smem>>
    %15 = vector.broadcast %14 : f32 to vector<4x64xf32>
    %16 = arith.addf %13, %15 : vector<4x64xf32>
    %c0_10 = arith.constant 0 : index
    %c0_11 = arith.constant 0 : index
    %17 = vector.load %arg6[%c0_10, %c0_11] : memref<4x64xf32, #tpu.memory_space<vmem>>, vector<4x64xf32>
    tpu.vector_store %arg6[%c0_10, %c0_11], %16 {strides = array<i32>} : memref<4x64xf32, #tpu.memory_space<vmem>>, vector<4x64xf32>,
    return
  }
  func.func @transform_0(%arg0: i32) -> (i32, i32) {
    %c0_i32 = arith.constant 0 : i32
    %c0_i32_0 = arith.constant 0 : i32
    return %arg0, %c0_i32 : i32, i32
  }
  func.func @transform_1(%arg0: i32) -> (i32, i32) {
    %c0_i32 = arith.constant 0 : i32
    %c0_i32_0 = arith.constant 0 : i32
    %c0_i32_1 = arith.constant 0 : i32
    return %c0_i32, %c0_i32_0 : i32, i32
  }
  func.func @transform_2(%arg0: i32) -> (i32, i32) {
    %c0_i32 = arith.constant 0 : i32
    %c0_i32_0 = arith.constant 0 : i32
    %c0_i32_1 = arith.constant 0 : i32
    return %c0_i32, %c0_i32_0 : i32, i32
  }
  func.func @transform_3(%arg0: i32) -> (i32, i32) {
    %c0_i32 = arith.constant 0 : i32
    %c0_i32_0 = arith.constant 0 : i32
    %c0_i32_1 = arith.constant 0 : i32
    return %c0_i32, %c0_i32_0 : i32, i32
  }
  func.func @transform_4(%arg0: i32) -> i32 {
    %c0_i32 = arith.constant 0 : i32
    %c0_i32_0 = arith.constant 0 : i32
    return %c0_i32 : i32
  }
  func.func @transform_5(%arg0: i32) -> (i32, i32) {
    %c0_i32 = arith.constant 0 : i32
    %c0_i32_0 = arith.constant 0 : i32
    return %c0_i32, %arg0 : i32, i32
  }
}

</mosaic_0001>

<bundles_post_ra>
// kernel: tile.8
= control target key start
LH: loop header
LB: loop body
LE: loop exit
PB: predicated region body
PF: predicated region fallthrough
CT: control target
= control target key end

     0   :  { %s22_s0 = inlined_call_operand.vmem [shape: f32[64], index: 0, kind: input, shape index: {}]   ;;  %s23_s1 = inlined_call_operand.vmem [shape: f32[4,64], index: 1, kind: output, shape index: {}]  }
   0x1   :  { %v4_v0 = vld [vmem:[%s22_s0] ss:$0 sm:$0xff] }
   0x2   :  { %5 = vst [vmem:[%s23_s1] sm:$0xf] %v4_v0 }

// kernel: tile.9
= control target key start
LH: loop header
LB: loop body
LE: loop exit
PB: predicated region body
PF: predicated region fallthrough
CT: control target
= control target key end

     0   :  { %s6_s8 = smov 3  ;;  %vm8_vm0 = vcmask 523264   ;;  %s30_s9 = smov 64   ;;  %vm15_vm1 = vcmask 1048064   ;;  %s50_s0 = inlined_call_operand.vmem [shape: f32[4,64], index: 0, kind: input, shape index: {}]   ;;  %s51_s1 = inlined_call_operand.vmem [shape: f32[1,256], index: 1, kind: output, shape index: {}]  }
   0x1   :  { %v4_v0 = vld [vmem:[%s50_s0] sm:$0xf]  ;;  %s11_s0 = smov 3 }
   0x2   :  { %5 = vst [vmem:[#allocation1] sm:$0xf] %v4_v0 }
   0x9   :  { %v12_v1 = vld [vmem:[#allocation1 + $0x1] ss:$2 sm:%s11_s0]   ;;  %v7_v2 = vld [vmem:[#allocation1] ss:$2 sm:%s6_s8]  }
   0xa   :  { %13 = vrot.lane.b32.xlu0 %v12_v1, %s30_s9  ;;  %9 = vst.msk [vmem:[#allocation0] ss:$8 sm:$0x3] %vm8_vm0, %v7_v2  }
  0x7c   :  { %v14_v3 = vpop.permute.xlu0 %13  }
  0x7d   :  { %16 = vst.msk [vmem:[#allocation0] ss:$8 sm:$0x3] %vm15_vm1, %v14_v3  }
  0x84   :  { %v20_v4 = vld [vmem:[#allocation0] sm:$0x1]  ;;  %v24_v5 = vld [vmem:[#allocation0 + $0x8] sm:$0x1] }
  0x85   :  { %22 = vst [vmem:[%s51_s1] sm:$0x1] %v20_v4  ;;  %28 = vst [vmem:[%s51_s1 + $0x1] sm:$0x1] %v24_v5 }

// kernel: linear_net_1.1
= control target key start
LH: loop header
LB: loop body
LE: loop exit
PB: predicated region body
PF: predicated region fallthrough
CT: control target
= control target key end

     0   :  { %v531_v1 = vmov 0   ;;  %v52_v31 = vlaneseq  ;;  %vm387_vm0 = vcmask 519168   ;;  %s671_s1 = inlined_call_operand.vmem [shape: bf16[128,256], index: 1, kind: input, shape index: {}]   ;;  %s672_s0 = inlined_call_operand.vmem [shape: f32[64,128], index: 0, kind: input, shape index: {}]   ;;  %s673_s3 = inlined_call_operand.vmem [shape: f32[4,256], index: 3, kind: input, shape index: {}]   ;;  %s674_s2 = inlined_call_operand.vmem [shape: f32[1,256], index: 2, kind: input, shape index: {}]   ;;  %s675_s4 = inlined_call_operand.<no memory space> [shape: f32[1], index: 4, kind: input, shape index: {}]   ;;  %s676_s5 = inlined_call_operand.vmem [shape: f32[4,64], index: 5, kind: output, shape index: {}]  }
   0x1   :  { %v442_v0 = vld [vmem:[%s671_s1 + $0x4] ss:$8 sps:$4 sm:$0xff]   ;;  %174 = vmatprep.mubr.bf16.mxu0 %v531_v1  ;;  %v444_v2 = vld [vmem:[%s671_s1] ss:$8 sps:$4 sm:$0xff]   ;;  %v445_v3 = vld [vmem:[%s671_s1 + $0x14] ss:$8 sps:$4 sm:$0xff]  }
   0x2   :  { %142 = vmatprep.subr.bf16.mxu0 %v442_v0  ;;  %v447_v4 = vld [vmem:[%s671_s1 + $0x10] ss:$8 sps:$4 sm:$0xff]   ;;  %v448_v5 = vld [vmem:[%s671_s1 + $0x24] ss:$8 sps:$4 sm:$0xff]   ;;  %v450_v6 = vld [vmem:[%s671_s1 + $0x20] ss:$8 sps:$4 sm:$0xff]  }
   0x3   :  { %143 = vmatpush1.bf16.msra.mxu0 %v444_v2  ;;  %v451_v7 = vld [vmem:[%s671_s1 + $0x34] ss:$8 sps:$4 sm:$0xff]   ;;  %v453_v8 = vld [vmem:[%s671_s1 + $0x30] ss:$8 sps:$4 sm:$0xff]   ;;  %v454_v9 = vld [vmem:[%s671_s1 + $0x44] ss:$8 sps:$4 sm:$0xff]  }
   0x4   :  { %144 = vmatprep.subr.bf16.mxu0 %v445_v3  ;;  %v456_v10 = vld [vmem:[%s671_s1 + $0x40] ss:$8 sps:$4 sm:$0xff]   ;;  %v457_v11 = vld [vmem:[%s671_s1 + $0x54] ss:$8 sps:$4 sm:$0xff]   ;;  %v459_v12 = vld [vmem:[%s671_s1 + $0x50] ss:$8 sps:$4 sm:$0xff]  }
   0x5   :  { %v460_v13 = vld [vmem:[%s671_s1 + $0x64] ss:$8 sps:$4 sm:$0xff]   ;;  %v462_v14 = vld [vmem:[%s671_s1 + $0x60] ss:$8 sps:$4 sm:$0xff]   ;;  %v463_v15 = vld [vmem:[%s671_s1 + $0x74] ss:$8 sps:$4 sm:$0xff]  }
   0x6   :  { %v465_v16 = vld [vmem:[%s671_s1 + $0x70] ss:$8 sps:$4 sm:$0xff]   ;;  %v22_v17 = vld [vmem:[%s672_s0] sm:$0xff]  ;;  %v23_v18 = vld [vmem:[%s672_s0 + $0x8] sm:$0xff]  ;;  %v53_v32 = vshrl.u32 %v52_v31, 7 }
   0x7   :  { %145 = vmatpush1.bf16.msra.mxu0 %v447_v4  ;;  %v30_v19 = vpack.c.bf16 %v23_v18, %v22_v17  ;;  %v24_v20 = vld [vmem:[%s672_s0 + $0x10] sm:$0xff]  ;;  %v25_v21 = vld [vmem:[%s672_s0 + $0x18] sm:$0xff]  ;;  %v26_v23 = vld [vmem:[%s672_s0 + $0x20] sm:$0xff] }
   0x8   :  { %146 = vmatprep.subr.bf16.mxu0 %v448_v5  ;;  %v31_v22 = vpack.c.bf16 %v25_v21, %v24_v20  ;;  %v27_v24 = vld [vmem:[%s672_s0 + $0x28] sm:$0xff]  ;;  %v28_v26 = vld [vmem:[%s672_s0 + $0x30] sm:$0xff]  ;;  %v29_v27 = vld [vmem:[%s672_s0 + $0x38] sm:$0xff]  ;;  %v54_v33 = vsub.s32 0, %v53_v32  ;;  %v58_v35 = vsub.s32 1, %v53_v32 }
   0x9   :  { %v32_v25 = vpack.c.bf16 %v27_v24, %v26_v23  ;;  %v33_v28 = vpack.c.bf16 %v29_v27, %v28_v26  ;;  %v637_v29 = vld [vmem:[%s673_s3] sm:$0xff] }
   0xa   :  { %v315_v30 = vcombine.high %v637_v29, %v637_v29  ;;  %v50_v34 = vld [vmem:[%s674_s2] sm:$0x3] }
   0xb   :  { %147 = vmatpush1.bf16.msra.mxu0 %v450_v6  ;;  %v644_v36 = vrot.slane %v50_v34, %v54_v33  ;;  %v646_v37 = vrot.slane %v50_v34, %v58_v35 }
   0xc   :  { %148 = vmatprep.subr.bf16.mxu0 %v451_v7  ;;  %381 = vmatprep.mubr.f32.mxu1 %v315_v30 }
   0xf   :  { %149 = vmatpush1.bf16.msra.mxu0 %v453_v8 }
  0x10   :  { %150 = vmatprep.subr.bf16.mxu0 %v454_v9 }
  0x13   :  { %151 = vmatpush1.bf16.msra.mxu0 %v456_v10 }
  0x14   :  { %152 = vmatprep.subr.bf16.mxu0 %v457_v11 }
  0x17   :  { %153 = vmatpush1.bf16.msra.mxu0 %v459_v12 }
  0x18   :  { %154 = vmatprep.subr.bf16.mxu0 %v460_v13 }
  0x1b   :  { %155 = vmatpush1.bf16.msra.mxu0 %v462_v14 }
  0x1c   :  { %156 = vmatprep.subr.bf16.mxu0 %v463_v15 }
  0x1f   :  { %157 = vmatpush1.bf16.msra.mxu0 %v465_v16 }
  0x22   :  { %175 = vmatmul.mubr.bf16.vlgmr.msra.gmra.mrb[0].mxu0 %v30_v19 }
  0x23   :  { %184 = vmatprep.mubr.bf16.mxu0 %v531_v1 }
  0x2a   :  { %185 = vmatmul.mubr.bf16.gmra.mrb[4].mxu0 %v31_v22 }
  0x2b   :  { %194 = vmatprep.mubr.bf16.mxu0 %v531_v1 }
  0x32   :  { %195 = vmatmul.mubr.bf16.gmra.mrb[8].mxu0 %v32_v25 }
  0x33   :  { %204 = vmatprep.mubr.bf16.mxu0 %v531_v1 }
  0x3a   :  { %205 = vmatmul.mubr.bf16.gmra.mrb[12].mxu0 %v33_v28 }
  0xf5   :  { %v176_v38 = vpop.f32.mrb[0].mxu0 }
  0xf6   :  { %v177_v39 = vadd.f32 %v176_v38, %v644_v36  ;;  %v178_v40 = vpop.f32.mrb[1].mxu0 }
  0xf7   :  { %v179_v41 = vadd.f32 %v178_v40, %v646_v37  ;;  %v180_v42 = vpop.f32.mrb[2].mxu0 }
  0xf8   :  { %v409_v43 = vmul.f32 -1.442695, %v177_v39  ;;  %v181_v44 = vadd.f32 %v180_v42, %v644_v36  ;;  %v182_v45 = vpop.f32.mrb[3].mxu0 }
  0xf9   :  { %v410_v46 = vmul.f32 -1.442695, %v179_v41  ;;  %v183_v47 = vadd.f32 %v182_v45, %v646_v37 }
  0xfa   :  { %467 = vpow2.f32 %v409_v43  ;;  %v411_v48 = vmul.f32 -1.442695, %v181_v44 }
  0xfb   :  { %469 = vpow2.f32 %v410_v46  ;;  %v412_v49 = vmul.f32 -1.442695, %v183_v47 }
  0xfc   :  { %471 = vpow2.f32 %v411_v48 }
  0xfd   :  { %473 = vpow2.f32 %v412_v49  ;;  %v186_v50 = vpop.f32.mrb[4].mxu0 }
  0xfe   :  { %v187_v51 = vadd.f32 %v186_v50, %v644_v36  ;;  %v188_v52 = vpop.f32.mrb[5].mxu0 }
  0xff   :  { %v189_v53 = vadd.f32 %v188_v52, %v646_v37  ;;  %v190_v54 = vpop.f32.mrb[6].mxu0 }
 0x100   :  { %v413_v55 = vmul.f32 -1.442695, %v187_v51  ;;  %v191_v56 = vadd.f32 %v190_v54, %v644_v36  ;;  %v192_v57 = vpop.f32.mrb[7].mxu0 }
 0x101   :  { %v414_v58 = vmul.f32 -1.442695, %v189_v53  ;;  %v193_v59 = vadd.f32 %v192_v57, %v646_v37 }
 0x102   :  { %475 = vpow2.f32 %v413_v55  ;;  %v415_v60 = vmul.f32 -1.442695, %v191_v56 }
 0x103   :  { %477 = vpow2.f32 %v414_v58  ;;  %v416_v61 = vmul.f32 -1.442695, %v193_v59 }
 0x104   :  { %v468_v62 = vpop.eup %467  ;;  %479 = vpow2.f32 %v415_v60 }
 0x105   :  { %v470_v63 = vpop.eup %469  ;;  %v263_v0 = vadd.f32 1.0, %v468_v62  ;;  %481 = vpow2.f32 %v416_v61  ;;  %v196_v1 = vpop.f32.mrb[8].mxu0 }
 0x106   :  { %v472_v2 = vpop.eup %471  ;;  %v264_v3 = vadd.f32 1.0, %v470_v63  ;;  %v197_v4 = vadd.f32 %v196_v1, %v644_v36  ;;  %v198_v5 = vpop.f32.mrb[9].mxu0 }
 0x107   :  { %v474_v6 = vpop.eup %473  ;;  %483 = vrcp.f32 %v263_v0  ;;  %v265_v7 = vadd.f32 1.0, %v472_v2  ;;  %v199_v8 = vadd.f32 %v198_v5, %v646_v37  ;;  %v200_v9 = vpop.f32.mrb[10].mxu0 }
 0x108   :  { %485 = vrcp.f32 %v264_v3  ;;  %v266_v10 = vadd.f32 1.0, %v474_v6  ;;  %v417_v11 = vmul.f32 -1.442695, %v197_v4  ;;  %v201_v12 = vadd.f32 %v200_v9, %v644_v36  ;;  %v202_v13 = vpop.f32.mrb[11].mxu0 }
 0x109   :  { %487 = vrcp.f32 %v265_v7  ;;  %v418_v14 = vmul.f32 -1.442695, %v199_v8  ;;  %v203_v15 = vadd.f32 %v202_v13, %v646_v37 }
 0x10a   :  { %489 = vrcp.f32 %v266_v10  ;;  %v419_v16 = vmul.f32 -1.442695, %v201_v12 }
 0x10b   :  { %491 = vpow2.f32 %v417_v11  ;;  %v420_v17 = vmul.f32 -1.442695, %v203_v15  ;;  %v313_v15 = vstv %s675_s4 }
 0x10c   :  { %v476_v18 = vpop.eup %475  ;;  %493 = vpow2.f32 %v418_v14 }
 0x10d   :  { %v478_v19 = vpop.eup %477  ;;  %v267_v20 = vadd.f32 1.0, %v476_v18  ;;  %495 = vpow2.f32 %v419_v16  ;;  %v206_v21 = vpop.f32.mrb[12].mxu0 }
 0x10e   :  { %v480_v22 = vpop.eup %479  ;;  %v268_v23 = vadd.f32 1.0, %v478_v19  ;;  %497 = vpow2.f32 %v420_v17  ;;  %v207_v24 = vadd.f32 %v206_v21, %v644_v36  ;;  %v208_v25 = vpop.f32.mrb[13].mxu0 }
 0x10f   :  { %v482_v26 = vpop.eup %481  ;;  %499 = vrcp.f32 %v267_v20  ;;  %v269_v27 = vadd.f32 1.0, %v480_v22  ;;  %v209_v28 = vadd.f32 %v208_v25, %v646_v37  ;;  %v210_v30 = vpop.f32.mrb[14].mxu0 }
 0x110   :  { %501 = vrcp.f32 %v268_v23  ;;  %v270_v31 = vadd.f32 1.0, %v482_v26  ;;  %v421_v32 = vmul.f32 -1.442695, %v207_v24  ;;  %v211_v33 = vadd.f32 %v210_v30, %v644_v36  ;;  %v212_v34 = vpop.f32.mrb[15].mxu0 }
 0x111   :  { %v484_v35 = vpop.eup %483  ;;  %503 = vrcp.f32 %v269_v27  ;;  %v422_v38 = vmul.f32 -1.442695, %v209_v28  ;;  %v213_v39 = vadd.f32 %v212_v34, %v646_v37 }
 0x112   :  { %v486_v40 = vpop.eup %485  ;;  %505 = vrcp.f32 %v270_v31  ;;  %v423_v41 = vmul.f32 -1.442695, %v211_v33 }
 0x113   :  { %v488_v42 = vpop.eup %487  ;;  %507 = vpow2.f32 %v421_v32  ;;  %v424_v43 = vmul.f32 -1.442695, %v213_v39 }
 0x114   :  { %v490_v44 = vpop.eup %489  ;;  %509 = vpow2.f32 %v422_v38  ;;  %v427_v45 = vpack.c.bf16 %v488_v42, %v484_v35 }
 0x115   :  { %v492_v46 = vpop.eup %491  ;;  %511 = vpow2.f32 %v423_v41  ;;  %v425_v47 = vpack.c.bf16 %v490_v44, %v486_v40 }
 0x116   :  { %v494_v48 = vpop.eup %493  ;;  %v271_v36 = vadd.f32 1.0, %v492_v46  ;;  %513 = vpow2.f32 %v424_v43 }
 0x117   :  { %v496_v49 = vpop.eup %495  ;;  %v272_v50 = vadd.f32 1.0, %v494_v48  ;;  %426 = vmatprep.subr.bf16.mxu1 %v425_v47 }
 0x118   :  { %v498_v51 = vpop.eup %497  ;;  %515 = vrcp.f32 %v271_v36  ;;  %v273_v37 = vadd.f32 1.0, %v496_v49  ;;  %428 = vmatpush1.bf16.xpose.msra.mxu1 %v427_v45 }
 0x119   :  { %v500_v52 = vpop.eup %499  ;;  %517 = vrcp.f32 %v272_v50  ;;  %v274_v53 = vadd.f32 1.0, %v498_v51 }
 0x11a   :  { %v502_v54 = vpop.eup %501  ;;  %519 = vrcp.f32 %v273_v37 }
 0x11b   :  { %v504_v55 = vpop.eup %503  ;;  %521 = vrcp.f32 %v274_v53 }
 0x11c   :  { %v506_v56 = vpop.eup %505  ;;  %v431_v57 = vpack.c.bf16 %v504_v55, %v500_v52 }
 0x11d   :  { %v508_v58 = vpop.eup %507  ;;  %v429_v59 = vpack.c.bf16 %v506_v56, %v502_v54 }
 0x11e   :  { %v510_v60 = vpop.eup %509  ;;  %v275_v61 = vadd.f32 1.0, %v508_v58 }
 0x11f   :  { %v512_v62 = vpop.eup %511  ;;  %v276_v63 = vadd.f32 1.0, %v510_v60  ;;  %430 = vmatprep.subr.bf16.mxu1 %v429_v59 }
 0x120   :  { %v514_v0 = vpop.eup %513  ;;  %523 = vrcp.f32 %v275_v61  ;;  %v277_v1 = vadd.f32 1.0, %v512_v62  ;;  %432 = vmatpush1.bf16.xpose.msra.mxu1 %v431_v57 }
 0x121   :  { %525 = vrcp.f32 %v276_v63  ;;  %v278_v2 = vadd.f32 1.0, %v514_v0 }
 0x122   :  { %v516_v3 = vpop.eup %515  ;;  %527 = vrcp.f32 %v277_v1 }
 0x123   :  { %v518_v4 = vpop.eup %517  ;;  %529 = vrcp.f32 %v278_v2 }
 0x124   :  { %v520_v5 = vpop.eup %519 }
 0x125   :  { %v522_v6 = vpop.eup %521  ;;  %v435_v7 = vpack.c.bf16 %v520_v5, %v516_v3 }
 0x126   :  { %v433_v8 = vpack.c.bf16 %v522_v6, %v518_v4 }
 0x128   :  { %434 = vmatprep.subr.bf16.mxu1 %v433_v8 }
 0x129   :  { %436 = vmatpush1.bf16.xpose.msra.mxu1 %v435_v7 }
 0x12a   :  { %v524_v9 = vpop.eup %523 }
 0x12b   :  { %v526_v10 = vpop.eup %525 }
 0x12c   :  { %v528_v11 = vpop.eup %527 }
 0x12d   :  { %v530_v12 = vpop.eup %529  ;;  %v439_v13 = vpack.c.bf16 %v528_v11, %v524_v9 }
 0x12e   :  { %v437_v14 = vpack.c.bf16 %v530_v12, %v526_v10 }
 0x130   :  { %438 = vmatprep.subr.bf16.mxu1 %v437_v14 }
 0x131   :  { %440 = vmatpush1.bf16.xpose.msra.mxu1 %v439_v13 }
 0x138   :  { %382 = vmatmul.mubr.f32.vlgmr.msra.gmra.mrb[0].mxu1 %v637_v29 }
 0x20b   :  { %v383_v16 = vpop.f32.mrb[0].mxu1 }
 0x20c   :  { %v384_v17 = vadd.f32 %v383_v16, %v313_v15  ;;  %v385_v18 = vpop.f32.mrb[1].mxu1 }
 0x20e   :  { %388 = vst.msk [vmem:[%s676_s5] sm:$0xf] %vm387_vm0, %v384_v17 }

</bundles_post_ra>
